<compile_context>
chip_gen: v7x
topology: tpu7x:2x2x1
jax: 0.10.0
libtpu: 0.0.40
codegen_flags: <defaults>
</compile_context>

<pallas_src>
import math
import functools

import numpy as np
import jax
import jax.numpy as jnp
from jax.experimental import pallas as pl
from jax.experimental.pallas import tpu as pltpu

# ----- model dimensions: Model(vocab_size) with block3 = ModelBlock(20, V, 64, 3, 3, 0.1) -----
VOCAB = 50          # small vocab for the synthetic run
VPAD  = 128         # lane-dense padded vocab for the output head
D_EMB = 20          # embedding dim / ModelBlock input size
HID   = 64          # FFM hidden_size
MEM   = 3           # FFM memory_size
CTX   = 3           # FFM context_size
MC    = MEM * CTX   # 9 aggregator channels
LN_EPS = 1e-5       # nn.LayerNorm default eps
LEAK   = 0.01       # nn.LeakyReLU default negative_slope


def _ceil8(n):
    return -(-n // 8) * 8


MCP      = _ceil8(MC)      # 16 : channel dim padded so every field is lane/row aligned
EMB_ROWS = _ceil8(VOCAB)   # 56 : 8-aligned embedding-table row count
SLAB_W   = 128             # one lane tile; every slab field starts at lane 0

# ----- f32 vector slab layout (one row per bias / LN parameter vector) -----
VROWS = {"b_thru": 0, "b_gout": 1, "b_y": 2, "b_gin": 3, "b_mix": 4, "b_post": 5,
         "ln0_g": 6, "ln0_b": 7, "ln1_g": 8, "ln1_b": 9,
         "b_lin": 10, "ln2_g": 11, "ln2_b": 12}
V_ROWS_TOTAL = 16


def _wslab_rows(B, T):
    """Row offsets of the bf16 matmul-weight slab (all 8-aligned, width 128)."""
    N = B * T
    rows = {}
    off = 0

    def take(name, n_rows):
        nonlocal off
        rows[name] = off
        off += _ceil8(n_rows)

    take("emb",   EMB_ROWS)   # [56, 20]
    take("thru",  D_EMB)      # [20, 64]
    take("gout",  D_EMB)      # [20, 64]
    take("y",     D_EMB)      # [20, 16]   (cols >= MC are zero)
    take("gin",   D_EMB)      # [20, 16]
    take("shift", T * N)      # [T*N, N]   stacked causal within-batch row shifts
    take("wmix",  T * MCP)    # [T*MCP, 64] stacked per-lag fused mixing weights
    take("post",  HID)        # [64, 20]
    take("lin",   D_EMB)      # [20, 128]  vocab-padded head
    rows["total"] = off
    return rows


def _layernorm(v, g=None, b=None, eps=LN_EPS):
    mu = jnp.mean(v, axis=-1, keepdims=True)
    var = jnp.mean(jnp.square(v - mu), axis=-1, keepdims=True)
    y = (v - mu) * jax.lax.rsqrt(var + eps)
    if g is not None:
        y = y * g + b
    return y


def _model_kernel(B, T, ids_ref, w_ref, v_ref, out_ref):
    N = B * T
    W = _wslab_rows(B, T)

    def wview(name, n_rows, n_cols):
        r0 = W[name]
        return w_ref[r0:r0 + n_rows, 0:n_cols]          # bf16 weight view, lane 0

    def vrow(name, n_cols):
        r0 = VROWS[name]
        return v_ref[r0:r0 + 1, 0:n_cols]                # [1, w] f32 (single use each)

    # ---- nn.Embedding: gather realised as one-hot @ table on the MXU ----
    ids = ids_ref[...]                                               # [N, 1] int32
    col = jax.lax.broadcasted_iota(jnp.int32, (N, EMB_ROWS), 1)
    onehot = (col == ids).astype(jnp.bfloat16)                       # [N, 56]
    x = jnp.dot(onehot, wview("emb", EMB_ROWS, D_EMB),
                preferred_element_type=jnp.float32)                  # [N, 20] f32

    # ---- Model.norm (LayerNorm(20), affine); Model.dropout -> identity (eval) ----
    x = _layernorm(x, vrow("ln0_g", D_EMB), vrow("ln0_b", D_EMB))
    x_bf = x.astype(jnp.bfloat16)

    # ---- FFM.pre: four lane-0-aligned bf16 matmuls (E fold already in w_y / w_gin) ----
    thru = jnp.dot(x_bf, wview("thru", D_EMB, HID),
                   preferred_element_type=jnp.float32) + vrow("b_thru", HID)       # [N, 64]
    g_out = jax.nn.sigmoid(jnp.dot(x_bf, wview("gout", D_EMB, HID),
                                   preferred_element_type=jnp.float32) + vrow("b_gout", HID))
    y_mc = jnp.dot(x_bf, wview("y", D_EMB, MCP),
                   preferred_element_type=jnp.float32) + vrow("b_y", MCP)          # [N, 16]
    g_in = jax.nn.sigmoid(jnp.dot(x_bf, wview("gin", D_EMB, MCP),
                                  preferred_element_type=jnp.float32) + vrow("b_gin", MCP))
    z = (y_mc * g_in).astype(jnp.bfloat16)               # [N, 16], pad channels are 0

    # ---- FFA causal decay recast as matmuls:
    #        Y[k*N + n, :] = z[n - k]  (within batch, zero-padded)     via shift stack
    #        mixed        = sum_k Y_k @ W_k  with  W_k = Re(g^k) w_mix_re + Im(g^k) w_mix_im
    #      (no concats / reshapes / unaligned slices; pure MXU + trivial VPU adds) ----
    shift = wview("shift", T * N, N)                                  # [T*N, N] bf16
    Y = jnp.dot(shift, z, preferred_element_type=jnp.float32)         # [T*N, 16] f32
    Y_bf = Y.astype(jnp.bfloat16)

    mixed = jnp.zeros((N, HID), jnp.float32)
    for k in range(T):                                   # static unroll; 8 tiny MXU pushes
        wk = w_ref[W["wmix"] + k * MCP:W["wmix"] + (k + 1) * MCP, 0:HID]   # [16, 64] bf16
        mixed += jnp.dot(Y_bf[k * N:(k + 1) * N, :], wk,
                         preferred_element_type=jnp.float32)
    mixed += vrow("b_mix", HID)

    # ---- FFM output gating + post projection ----
    y_mid = _layernorm(mixed) * g_out + thru * (1.0 - g_out)                        # [N, 64]
    ffm = jnp.dot(y_mid.astype(jnp.bfloat16), wview("post", HID, D_EMB),
                  preferred_element_type=jnp.float32) + vrow("b_post", D_EMB)       # [N, 20]

    # ---- FFM.ln_out (no affine) immediately followed by ModelBlock.norm1 (affine):
    #      fused exactly into a single mean/var pass. ----
    mu = jnp.mean(ffm, axis=-1, keepdims=True)
    var = jnp.mean(jnp.square(ffm - mu), axis=-1, keepdims=True)
    u = (ffm - mu) * jax.lax.rsqrt(var + LN_EPS)                      # ln_out output
    xb = u * jax.lax.rsqrt(var / (var + LN_EPS) + LN_EPS) * vrow("ln1_g", D_EMB) + vrow("ln1_b", D_EMB)

    # ---- linear -> norm2 over the true V columns (pad logits are exactly 0) -> LeakyReLU ----
    logits = jnp.dot(xb.astype(jnp.bfloat16), wview("lin", D_EMB, VPAD),
                     preferred_element_type=jnp.float32) + vrow("b_lin", VPAD)      # [N, 128]
    mu2 = jnp.sum(logits, axis=-1, keepdims=True) / VOCAB
    ex2 = jnp.sum(logits * logits, axis=-1, keepdims=True) / VOCAB
    var2 = ex2 - mu2 * mu2
    y2 = (logits - mu2) * jax.lax.rsqrt(var2 + LN_EPS) * vrow("ln2_g", VPAD) + vrow("ln2_b", VPAD)
    out_ref[...] = jnp.where(y2 >= 0, y2, LEAK * y2)     # pad columns stay exactly 0


def init_params(key, vocab, batch, seq):
    """Torch-style random weights packed into one bf16 matmul slab + one f32 vector slab."""
    B, T = batch, seq
    N = B * T
    ks = jax.random.split(key, 5)

    def lin(k, fan_in, fan_out):
        k1, k2 = jax.random.split(k)
        bound = 1.0 / math.sqrt(fan_in)
        w = jax.random.uniform(k1, (fan_in, fan_out), jnp.float32, -bound, bound)
        b = jax.random.uniform(k2, (fan_out,), jnp.float32, -bound, bound)
        return np.asarray(w), np.asarray(b)

    emb = np.asarray(jax.random.normal(ks[0], (vocab, D_EMB), jnp.float32))

    # FFM.pre : Linear(D_EMB, 2*MEM + 2*HID), partitioned [y | thru | gate_in | gate_out]
    w_pre, b_pre = lin(ks[1], D_EMB, 2 * MEM + 2 * HID)
    w_y_mem,  b_y_mem  = w_pre[:, :MEM],                     b_pre[:MEM]
    w_thru,   b_thru   = w_pre[:, MEM:MEM + HID],            b_pre[MEM:MEM + HID]
    w_gin_mem, b_gin_mem = w_pre[:, MEM + HID:2 * MEM + HID], b_pre[MEM + HID:2 * MEM + HID]
    w_gout,   b_gout   = w_pre[:, 2 * MEM + HID:],           b_pre[2 * MEM + HID:]

    # Fold the memory->context broadcast E (column repeat over CTX) into y / gate_in.
    w_y,  b_y  = np.repeat(w_y_mem, CTX, axis=1),  np.repeat(b_y_mem, CTX)      # [20, 9], [9]
    w_gin, b_gin = np.repeat(w_gin_mem, CTX, axis=1), np.repeat(b_gin_mem, CTX)

    w_mix,  b_mix  = lin(ks[2], 2 * MC, HID)
    w_post, b_post = lin(ks[3], HID, D_EMB)
    w_lin,  b_lin  = lin(ks[4], D_EMB, vocab)

    # FFA decay / oscillation: gamma[m*CTX+c] = exp(-|a_m|) * exp(1j*b_c), dt = 1.
    a = np.linspace(-math.e, -1e-6, MEM)
    bfreq = 2.0 * math.pi / np.linspace(1.0, 1024.0, CTX)
    decay = np.exp(-np.abs(a))                                                   # [MEM]
    kk = np.arange(T, dtype=np.float64)[:, None, None]                           # [T,1,1]
    p_re = ((decay[None, :, None] ** kk) * np.cos(kk * bfreq[None, None, :])).reshape(T, MC)
    p_im = ((decay[None, :, None] ** kk) * np.sin(kk * bfreq[None, None, :])).reshape(T, MC)

    # Per-lag fused mixing weights  W_k = diag(Re g^k) @ w_mix[:MC] + diag(Im g^k) @ w_mix[MC:].
    wmix_stack = np.zeros((T * MCP, HID), np.float32)
    for k in range(T):
        wmix_stack[k * MCP:k * MCP + MC, :] = (p_re[k][:, None] * w_mix[:MC, :]
                                               + p_im[k][:, None] * w_mix[MC:2 * MC, :])

    # Stacked causal within-batch row shifts: (Shift_k @ z)[b*T+t] = z[b*T+t-k] (0 if t<k).
    shift = np.zeros((T * N, N), np.float32)
    for k in range(T):
        for b_i in range(B):
            for s in range(T - k):
                shift[k * N + b_i * T + s + k, b_i * T + s] = 1.0

    # ---- bf16 matmul-weight slab: width 128, every field at lane 0 / 8-aligned row ----
    W = _wslab_rows(B, T)
    wslab = np.zeros((W["total"], SLAB_W), np.float32)

    def wput(name, m):
        r = W[name]
        wslab[r:r + m.shape[0], 0:m.shape[1]] = m

    wput("emb",  emb)                       # rows 50..55 stay zero (never selected)
    wput("thru", w_thru)
    wput("gout", w_gout)
    wput("y",    w_y)                       # cols MC..MCP stay zero
    wput("gin",  w_gin)
    wput("shift", shift)
    wput("wmix",  wmix_stack)
    wput("post",  w_post)
    w_lin_pad = np.zeros((D_EMB, VPAD), np.float32)
    w_lin_pad[:, :vocab] = w_lin
    wput("lin", w_lin_pad)

    # ---- f32 vector slab (biases / LayerNorm params), one row each ----
    vslab = np.zeros((V_ROWS_TOTAL, SLAB_W), np.float32)

    def vput(name, v):
        vslab[VROWS[name], 0:v.shape[0]] = v

    vput("b_thru", b_thru); vput("b_gout", b_gout)
    vput("b_y", b_y);       vput("b_gin", b_gin)
    vput("b_mix", b_mix);   vput("b_post", b_post)
    vput("ln0_g", np.ones(D_EMB, np.float32));  vput("ln0_b", np.zeros(D_EMB, np.float32))
    vput("ln1_g", np.ones(D_EMB, np.float32));  vput("ln1_b", np.zeros(D_EMB, np.float32))
    b_lin_pad = np.zeros(VPAD, np.float32); b_lin_pad[:vocab] = b_lin
    ln2_g = np.zeros(VPAD, np.float32);     ln2_g[:vocab] = 1.0
    vput("b_lin", b_lin_pad); vput("ln2_g", ln2_g); vput("ln2_b", np.zeros(VPAD, np.float32))

    return jnp.asarray(wslab, jnp.bfloat16), jnp.asarray(vslab, jnp.float32)


@jax.jit
def model_forward_padded(ids, wslab, vslab):
    """Performance entry point: returns vocab-padded [B, T, VPAD] logits (pads are 0)."""
    B, T = ids.shape
    N = B * T
    ids_flat = ids.reshape(N, 1).astype(jnp.int32)       # batch-major flatten (free)

    kernel = functools.partial(_model_kernel, B, T)
    out_flat = pl.pallas_call(
        kernel,
        out_shape=jax.ShapeDtypeStruct((N, VPAD), jnp.float32),
        in_specs=[pl.BlockSpec(memory_space=pltpu.MemorySpace.VMEM)] * 3,
        out_specs=pl.BlockSpec(memory_space=pltpu.MemorySpace.VMEM),
    )(ids_flat, wslab, vslab)

    return out_flat.reshape(B, T, VPAD)                  # metadata-only reshape


@jax.jit
def model_forward(ids, wslab, vslab):
    """Module-faithful view: [B, T, VOCAB] (slice deferred here per review)."""
    return model_forward_padded(ids, wslab, vslab)[..., :VOCAB]


if __name__ == "__main__":
    B, T = 2, 8
    key = jax.random.PRNGKey(0)
    pkey, dkey = jax.random.split(key)

    wslab, vslab = init_params(pkey, VOCAB, B, T)
    ids = jax.random.randint(dkey, (B, T), 0, VOCAB, dtype=jnp.int32)

    out = model_forward(ids, wslab, vslab)
    jax.block_until_ready(out)

    assert out.shape == (B, T, VOCAB), out.shape
    assert bool(jnp.all(jnp.isfinite(out)))
    print("KERNEL_OK")
</pallas_src>

<mosaic_0001>
module attributes {stable_mosaic.version = 11 : i64} {
  func.func @_model_kernel(%arg0: memref<16x1xi32, #tpu.memory_space<vmem>>, %arg1: memref<496x128xbf16, #tpu.memory_space<vmem>>, %arg2: memref<16x128xf32, #tpu.memory_space<vmem>>, %arg3: memref<16x128xf32, #tpu.memory_space<vmem>>) attributes {dimension_semantics = [], scalar_prefetch = 0 : i64, scratch_operands = 0 : i64, tpu.core_type = #tpu.core_type<tc>} {
    %c0 = arith.constant 0 : index
    %c0_0 = arith.constant 0 : index
    %0 = vector.load %arg0[%c0, %c0_0] : memref<16x1xi32, #tpu.memory_space<vmem>>, vector<16x1xi32>
    %1 = tpu.iota {dimensions = array<i32: 1>} : vector<16x56xi32>
    %2 = vector.broadcast %0 : vector<16x1xi32> to vector<16x56xi32>
    %3 = arith.cmpi eq, %1, %2 : vector<16x56xi32>
    %4 = arith.extui %3 : vector<16x56xi1> to vector<16x56xi32>
    %5 = arith.sitofp %4 : vector<16x56xi32> to vector<16x56xf32>
    %6 = arith.truncf %5 : vector<16x56xf32> to vector<16x56xbf16>
    %c0_1 = arith.constant 0 : index
    %c0_2 = arith.constant 0 : index
    %7 = vector.load %arg1[%c0_1, %c0_2] : memref<496x128xbf16, #tpu.memory_space<vmem>>, vector<56x20xbf16>
    %cst = arith.constant dense<0.000000e+00> : vector<16x20xf32>
    %8 = tpu.matmul %6, %7, %cst {dimension_numbers = #tpu.dot_dimension_numbers<[1], [0], [0], [1], [0, 0, 1, 1], [], []>} : vector<16x56xbf16>, vector<56x20xbf16>, vector<16x20xf32> -> vector<16x20xf32>
    %c6 = arith.constant 6 : index
    %c0_3 = arith.constant 0 : index
    %9 = vector.load %arg2[%c6, %c0_3] : memref<16x128xf32, #tpu.memory_space<vmem>>, vector<1x20xf32>
    %c7 = arith.constant 7 : index
    %c0_4 = arith.constant 0 : index
    %10 = vector.load %arg2[%c7, %c0_4] : memref<16x128xf32, #tpu.memory_space<vmem>>, vector<1x20xf32>
    %cst_5 = arith.constant dense<0.000000e+00> : vector<16xf32>
    %11 = vector.multi_reduction <add>, %8, %cst_5 [1] : vector<16x20xf32> to vector<16xf32>
    %12 = vector.shape_cast %11 : vector<16xf32> to vector<16x1xf32>
    %cst_6 = arith.constant 2.000000e+01 : f32
    %13 = vector.broadcast %cst_6 : f32 to vector<16x1xf32>
    %14 = arith.divf %12, %13 : vector<16x1xf32>
    %15 = vector.broadcast %14 : vector<16x1xf32> to vector<16x20xf32>
    %16 = arith.subf %8, %15 : vector<16x20xf32>
    %17 = arith.mulf %16, %16 : vector<16x20xf32>
    %cst_7 = arith.constant dense<0.000000e+00> : vector<16xf32>
    %18 = vector.multi_reduction <add>, %17, %cst_7 [1] : vector<16x20xf32> to vector<16xf32>
    %19 = vector.shape_cast %18 : vector<16xf32> to vector<16x1xf32>
    %cst_8 = arith.constant 2.000000e+01 : f32
    %20 = vector.broadcast %cst_8 : f32 to vector<16x1xf32>
    %21 = arith.divf %19, %20 : vector<16x1xf32>
    %22 = vector.broadcast %14 : vector<16x1xf32> to vector<16x20xf32>
    %23 = arith.subf %8, %22 : vector<16x20xf32>
    %cst_9 = arith.constant 9.99999974E-6 : f32
    %24 = vector.broadcast %cst_9 : f32 to vector<16x1xf32>
    %25 = arith.addf %21, %24 : vector<16x1xf32>
    %26 = math.rsqrt %25 : vector<16x1xf32>
    %27 = vector.broadcast %26 : vector<16x1xf32> to vector<16x20xf32>
    %28 = arith.mulf %23, %27 : vector<16x20xf32>
    %29 = vector.broadcast %9 : vector<1x20xf32> to vector<16x20xf32>
    %30 = arith.mulf %28, %29 : vector<16x20xf32>
    %31 = vector.broadcast %10 : vector<1x20xf32> to vector<16x20xf32>
    %32 = arith.addf %30, %31 : vector<16x20xf32>
    %33 = arith.truncf %32 : vector<16x20xf32> to vector<16x20xbf16>
    %c56 = arith.constant 56 : index
    %c0_10 = arith.constant 0 : index
    %34 = vector.load %arg1[%c56, %c0_10] : memref<496x128xbf16, #tpu.memory_space<vmem>>, vector<20x64xbf16>
    %cst_11 = arith.constant dense<0.000000e+00> : vector<16x64xf32>
    %35 = tpu.matmul %33, %34, %cst_11 {dimension_numbers = #tpu.dot_dimension_numbers<[1], [0], [0], [1], [0, 0, 1, 1], [], []>} : vector<16x20xbf16>, vector<20x64xbf16>, vector<16x64xf32> -> vector<16x64xf32>
    %c0_12 = arith.constant 0 : index
    %c0_13 = arith.constant 0 : index
    %36 = vector.load %arg2[%c0_12, %c0_13] : memref<16x128xf32, #tpu.memory_space<vmem>>, vector<1x64xf32>
    %37 = vector.broadcast %36 : vector<1x64xf32> to vector<16x64xf32>
    %38 = arith.addf %35, %37 : vector<16x64xf32>
    %c80 = arith.constant 80 : index
    %c0_14 = arith.constant 0 : index
    %39 = vector.load %arg1[%c80, %c0_14] : memref<496x128xbf16, #tpu.memory_space<vmem>>, vector<20x64xbf16>
    %cst_15 = arith.constant dense<0.000000e+00> : vector<16x64xf32>
    %40 = tpu.matmul %33, %39, %cst_15 {dimension_numbers = #tpu.dot_dimension_numbers<[1], [0], [0], [1], [0, 0, 1, 1], [], []>} : vector<16x20xbf16>, vector<20x64xbf16>, vector<16x64xf32> -> vector<16x64xf32>
    %c1 = arith.constant 1 : index
    %c0_16 = arith.constant 0 : index
    %41 = vector.load %arg2[%c1, %c0_16] : memref<16x128xf32, #tpu.memory_space<vmem>>, vector<1x64xf32>
    %42 = vector.broadcast %41 : vector<1x64xf32> to vector<16x64xf32>
    %43 = arith.addf %40, %42 : vector<16x64xf32>
    %44 = arith.negf %43 : vector<16x64xf32>
    %45 = math.exp %44 : vector<16x64xf32>
    %cst_17 = arith.constant 1.000000e+00 : f32
    %46 = vector.broadcast %cst_17 : f32 to vector<16x64xf32>
    %47 = arith.addf %46, %45 : vector<16x64xf32>
    %48 = arith.divf %46, %47 : vector<16x64xf32>
    %c104 = arith.constant 104 : index
    %c0_18 = arith.constant 0 : index
    %49 = vector.load %arg1[%c104, %c0_18] : memref<496x128xbf16, #tpu.memory_space<vmem>>, vector<20x16xbf16>
    %cst_19 = arith.constant dense<0.000000e+00> : vector<16x16xf32>
    %50 = tpu.matmul %33, %49, %cst_19 {dimension_numbers = #tpu.dot_dimension_numbers<[1], [0], [0], [1], [0, 0, 1, 1], [], []>} : vector<16x20xbf16>, vector<20x16xbf16>, vector<16x16xf32> -> vector<16x16xf32>
    %c2 = arith.constant 2 : index
    %c0_20 = arith.constant 0 : index
    %51 = vector.load %arg2[%c2, %c0_20] : memref<16x128xf32, #tpu.memory_space<vmem>>, vector<1x16xf32>
    %52 = vector.broadcast %51 : vector<1x16xf32> to vector<16x16xf32>
    %53 = arith.addf %50, %52 : vector<16x16xf32>
    %c128 = arith.constant 128 : index
    %c0_21 = arith.constant 0 : index
    %54 = vector.load %arg1[%c128, %c0_21] : memref<496x128xbf16, #tpu.memory_space<vmem>>, vector<20x16xbf16>
    %cst_22 = arith.constant dense<0.000000e+00> : vector<16x16xf32>
    %55 = tpu.matmul %33, %54, %cst_22 {dimension_numbers = #tpu.dot_dimension_numbers<[1], [0], [0], [1], [0, 0, 1, 1], [], []>} : vector<16x20xbf16>, vector<20x16xbf16>, vector<16x16xf32> -> vector<16x16xf32>
    %c3 = arith.constant 3 : index
    %c0_23 = arith.constant 0 : index
    %56 = vector.load %arg2[%c3, %c0_23] : memref<16x128xf32, #tpu.memory_space<vmem>>, vector<1x16xf32>
    %57 = vector.broadcast %56 : vector<1x16xf32> to vector<16x16xf32>
    %58 = arith.addf %55, %57 : vector<16x16xf32>
    %59 = arith.negf %58 : vector<16x16xf32>
    %60 = math.exp %59 : vector<16x16xf32>
    %cst_24 = arith.constant 1.000000e+00 : f32
    %61 = vector.broadcast %cst_24 : f32 to vector<16x16xf32>
    %62 = arith.addf %61, %60 : vector<16x16xf32>
    %63 = arith.divf %61, %62 : vector<16x16xf32>
    %64 = arith.mulf %53, %63 : vector<16x16xf32>
    %65 = arith.truncf %64 : vector<16x16xf32> to vector<16x16xbf16>
    %c152 = arith.constant 152 : index
    %c0_25 = arith.constant 0 : index
    %66 = vector.load %arg1[%c152, %c0_25] : memref<496x128xbf16, #tpu.memory_space<vmem>>, vector<128x16xbf16>
    %cst_26 = arith.constant dense<0.000000e+00> : vector<128x16xf32>
    %67 = tpu.matmul %66, %65, %cst_26 {dimension_numbers = #tpu.dot_dimension_numbers<[1], [0], [0], [1], [0, 0, 1, 1], [], []>} : vector<128x16xbf16>, vector<16x16xbf16>, vector<128x16xf32> -> vector<128x16xf32>
    %68 = arith.truncf %67 : vector<128x16xf32> to vector<128x16xbf16>
    %cst_27 = arith.constant 0.000000e+00 : f32
    %69 = vector.broadcast %cst_27 : f32 to vector<16x64xf32>
    %c280 = arith.constant 280 : index
    %c0_28 = arith.constant 0 : index
    %70 = vector.load %arg1[%c280, %c0_28] : memref<496x128xbf16, #tpu.memory_space<vmem>>, vector<16x64xbf16>
    %71 = vector.extract_strided_slice %68 {offsets = [0, 0], sizes = [16, 16], strides = [1, 1]} : vector<128x16xbf16> to vector<16x16xbf16>
    %cst_29 = arith.constant dense<0.000000e+00> : vector<16x64xf32>
    %72 = tpu.matmul %71, %70, %cst_29 {dimension_numbers = #tpu.dot_dimension_numbers<[1], [0], [0], [1], [0, 0, 1, 1], [], []>} : vector<16x16xbf16>, vector<16x64xbf16>, vector<16x64xf32> -> vector<16x64xf32>
    %73 = arith.addf %69, %72 : vector<16x64xf32>
    %c296 = arith.constant 296 : index
    %c0_30 = arith.constant 0 : index
    %74 = vector.load %arg1[%c296, %c0_30] : memref<496x128xbf16, #tpu.memory_space<vmem>>, vector<16x64xbf16>
    %75 = vector.extract_strided_slice %68 {offsets = [16, 0], sizes = [16, 16], strides = [1, 1]} : vector<128x16xbf16> to vector<16x16xbf16>
    %cst_31 = arith.constant dense<0.000000e+00> : vector<16x64xf32>
    %76 = tpu.matmul %75, %74, %cst_31 {dimension_numbers = #tpu.dot_dimension_numbers<[1], [0], [0], [1], [0, 0, 1, 1], [], []>} : vector<16x16xbf16>, vector<16x64xbf16>, vector<16x64xf32> -> vector<16x64xf32>
    %77 = arith.addf %73, %76 : vector<16x64xf32>
    %c312 = arith.constant 312 : index
    %c0_32 = arith.constant 0 : index
    %78 = vector.load %arg1[%c312, %c0_32] : memref<496x128xbf16, #tpu.memory_space<vmem>>, vector<16x64xbf16>
    %79 = vector.extract_strided_slice %68 {offsets = [32, 0], sizes = [16, 16], strides = [1, 1]} : vector<128x16xbf16> to vector<16x16xbf16>
    %cst_33 = arith.constant dense<0.000000e+00> : vector<16x64xf32>
    %80 = tpu.matmul %79, %78, %cst_33 {dimension_numbers = #tpu.dot_dimension_numbers<[1], [0], [0], [1], [0, 0, 1, 1], [], []>} : vector<16x16xbf16>, vector<16x64xbf16>, vector<16x64xf32> -> vector<16x64xf32>
    %81 = arith.addf %77, %80 : vector<16x64xf32>
    %c328 = arith.constant 328 : index
    %c0_34 = arith.constant 0 : index
    %82 = vector.load %arg1[%c328, %c0_34] : memref<496x128xbf16, #tpu.memory_space<vmem>>, vector<16x64xbf16>
    %83 = vector.extract_strided_slice %68 {offsets = [48, 0], sizes = [16, 16], strides = [1, 1]} : vector<128x16xbf16> to vector<16x16xbf16>
    %cst_35 = arith.constant dense<0.000000e+00> : vector<16x64xf32>
    %84 = tpu.matmul %83, %82, %cst_35 {dimension_numbers = #tpu.dot_dimension_numbers<[1], [0], [0], [1], [0, 0, 1, 1], [], []>} : vector<16x16xbf16>, vector<16x64xbf16>, vector<16x64xf32> -> vector<16x64xf32>
    %85 = arith.addf %81, %84 : vector<16x64xf32>
    %c344 = arith.constant 344 : index
    %c0_36 = arith.constant 0 : index
    %86 = vector.load %arg1[%c344, %c0_36] : memref<496x128xbf16, #tpu.memory_space<vmem>>, vector<16x64xbf16>
    %87 = vector.extract_strided_slice %68 {offsets = [64, 0], sizes = [16, 16], strides = [1, 1]} : vector<128x16xbf16> to vector<16x16xbf16>
    %cst_37 = arith.constant dense<0.000000e+00> : vector<16x64xf32>
    %88 = tpu.matmul %87, %86, %cst_37 {dimension_numbers = #tpu.dot_dimension_numbers<[1], [0], [0], [1], [0, 0, 1, 1], [], []>} : vector<16x16xbf16>, vector<16x64xbf16>, vector<16x64xf32> -> vector<16x64xf32>
    %89 = arith.addf %85, %88 : vector<16x64xf32>
    %c360 = arith.constant 360 : index
    %c0_38 = arith.constant 0 : index
    %90 = vector.load %arg1[%c360, %c0_38] : memref<496x128xbf16, #tpu.memory_space<vmem>>, vector<16x64xbf16>
    %91 = vector.extract_strided_slice %68 {offsets = [80, 0], sizes = [16, 16], strides = [1, 1]} : vector<128x16xbf16> to vector<16x16xbf16>
    %cst_39 = arith.constant dense<0.000000e+00> : vector<16x64xf32>
    %92 = tpu.matmul %91, %90, %cst_39 {dimension_numbers = #tpu.dot_dimension_numbers<[1], [0], [0], [1], [0, 0, 1, 1], [], []>} : vector<16x16xbf16>, vector<16x64xbf16>, vector<16x64xf32> -> vector<16x64xf32>
    %93 = arith.addf %89, %92 : vector<16x64xf32>
    %c376 = arith.constant 376 : index
    %c0_40 = arith.constant 0 : index
    %94 = vector.load %arg1[%c376, %c0_40] : memref<496x128xbf16, #tpu.memory_space<vmem>>, vector<16x64xbf16>
    %95 = vector.extract_strided_slice %68 {offsets = [96, 0], sizes = [16, 16], strides = [1, 1]} : vector<128x16xbf16> to vector<16x16xbf16>
    %cst_41 = arith.constant dense<0.000000e+00> : vector<16x64xf32>
    %96 = tpu.matmul %95, %94, %cst_41 {dimension_numbers = #tpu.dot_dimension_numbers<[1], [0], [0], [1], [0, 0, 1, 1], [], []>} : vector<16x16xbf16>, vector<16x64xbf16>, vector<16x64xf32> -> vector<16x64xf32>
    %97 = arith.addf %93, %96 : vector<16x64xf32>
    %c392 = arith.constant 392 : index
    %c0_42 = arith.constant 0 : index
    %98 = vector.load %arg1[%c392, %c0_42] : memref<496x128xbf16, #tpu.memory_space<vmem>>, vector<16x64xbf16>
    %99 = vector.extract_strided_slice %68 {offsets = [112, 0], sizes = [16, 16], strides = [1, 1]} : vector<128x16xbf16> to vector<16x16xbf16>
    %cst_43 = arith.constant dense<0.000000e+00> : vector<16x64xf32>
    %100 = tpu.matmul %99, %98, %cst_43 {dimension_numbers = #tpu.dot_dimension_numbers<[1], [0], [0], [1], [0, 0, 1, 1], [], []>} : vector<16x16xbf16>, vector<16x64xbf16>, vector<16x64xf32> -> vector<16x64xf32>
    %101 = arith.addf %97, %100 : vector<16x64xf32>
    %c4 = arith.constant 4 : index
    %c0_44 = arith.constant 0 : index
    %102 = vector.load %arg2[%c4, %c0_44] : memref<16x128xf32, #tpu.memory_space<vmem>>, vector<1x64xf32>
    %103 = vector.broadcast %102 : vector<1x64xf32> to vector<16x64xf32>
    %104 = arith.addf %101, %103 : vector<16x64xf32>
    %cst_45 = arith.constant dense<0.000000e+00> : vector<16xf32>
    %105 = vector.multi_reduction <add>, %104, %cst_45 [1] : vector<16x64xf32> to vector<16xf32>
    %106 = vector.shape_cast %105 : vector<16xf32> to vector<16x1xf32>
    %cst_46 = arith.constant 6.400000e+01 : f32
    %107 = vector.broadcast %cst_46 : f32 to vector<16x1xf32>
    %108 = arith.divf %106, %107 : vector<16x1xf32>
    %109 = vector.broadcast %108 : vector<16x1xf32> to vector<16x64xf32>
    %110 = arith.subf %104, %109 : vector<16x64xf32>
    %111 = arith.mulf %110, %110 : vector<16x64xf32>
    %cst_47 = arith.constant dense<0.000000e+00> : vector<16xf32>
    %112 = vector.multi_reduction <add>, %111, %cst_47 [1] : vector<16x64xf32> to vector<16xf32>
    %113 = vector.shape_cast %112 : vector<16xf32> to vector<16x1xf32>
    %cst_48 = arith.constant 6.400000e+01 : f32
    %114 = vector.broadcast %cst_48 : f32 to vector<16x1xf32>
    %115 = arith.divf %113, %114 : vector<16x1xf32>
    %116 = vector.broadcast %108 : vector<16x1xf32> to vector<16x64xf32>
    %117 = arith.subf %104, %116 : vector<16x64xf32>
    %cst_49 = arith.constant 9.99999974E-6 : f32
    %118 = vector.broadcast %cst_49 : f32 to vector<16x1xf32>
    %119 = arith.addf %115, %118 : vector<16x1xf32>
    %120 = math.rsqrt %119 : vector<16x1xf32>
    %121 = vector.broadcast %120 : vector<16x1xf32> to vector<16x64xf32>
    %122 = arith.mulf %117, %121 : vector<16x64xf32>
    %123 = arith.mulf %122, %48 : vector<16x64xf32>
    %cst_50 = arith.constant 1.000000e+00 : f32
    %124 = vector.broadcast %cst_50 : f32 to vector<16x64xf32>
    %125 = arith.subf %124, %48 : vector<16x64xf32>
    %126 = arith.mulf %38, %125 : vector<16x64xf32>
    %127 = arith.addf %123, %126 : vector<16x64xf32>
    %128 = arith.truncf %127 : vector<16x64xf32> to vector<16x64xbf16>
    %c408 = arith.constant 408 : index
    %c0_51 = arith.constant 0 : index
    %129 = vector.load %arg1[%c408, %c0_51] : memref<496x128xbf16, #tpu.memory_space<vmem>>, vector<64x20xbf16>
    %cst_52 = arith.constant dense<0.000000e+00> : vector<16x20xf32>
    %130 = tpu.matmul %128, %129, %cst_52 {dimension_numbers = #tpu.dot_dimension_numbers<[1], [0], [0], [1], [0, 0, 1, 1], [], []>} : vector<16x64xbf16>, vector<64x20xbf16>, vector<16x20xf32> -> vector<16x20xf32>
    %c5 = arith.constant 5 : index
    %c0_53 = arith.constant 0 : index
    %131 = vector.load %arg2[%c5, %c0_53] : memref<16x128xf32, #tpu.memory_space<vmem>>, vector<1x20xf32>
    %132 = vector.broadcast %131 : vector<1x20xf32> to vector<16x20xf32>
    %133 = arith.addf %130, %132 : vector<16x20xf32>
    %cst_54 = arith.constant dense<0.000000e+00> : vector<16xf32>
    %134 = vector.multi_reduction <add>, %133, %cst_54 [1] : vector<16x20xf32> to vector<16xf32>
    %135 = vector.shape_cast %134 : vector<16xf32> to vector<16x1xf32>
    %cst_55 = arith.constant 2.000000e+01 : f32
    %136 = vector.broadcast %cst_55 : f32 to vector<16x1xf32>
    %137 = arith.divf %135, %136 : vector<16x1xf32>
    %138 = vector.broadcast %137 : vector<16x1xf32> to vector<16x20xf32>
    %139 = arith.subf %133, %138 : vector<16x20xf32>
    %140 = arith.mulf %139, %139 : vector<16x20xf32>
    %cst_56 = arith.constant dense<0.000000e+00> : vector<16xf32>
    %141 = vector.multi_reduction <add>, %140, %cst_56 [1] : vector<16x20xf32> to vector<16xf32>
    %142 = vector.shape_cast %141 : vector<16xf32> to vector<16x1xf32>
    %cst_57 = arith.constant 2.000000e+01 : f32
    %143 = vector.broadcast %cst_57 : f32 to vector<16x1xf32>
    %144 = arith.divf %142, %143 : vector<16x1xf32>
    %145 = vector.broadcast %137 : vector<16x1xf32> to vector<16x20xf32>
    %146 = arith.subf %133, %145 : vector<16x20xf32>
    %cst_58 = arith.constant 9.99999974E-6 : f32
    %147 = vector.broadcast %cst_58 : f32 to vector<16x1xf32>
    %148 = arith.addf %144, %147 : vector<16x1xf32>
    %149 = math.rsqrt %148 : vector<16x1xf32>
    %150 = vector.broadcast %149 : vector<16x1xf32> to vector<16x20xf32>
    %151 = arith.mulf %146, %150 : vector<16x20xf32>
    %cst_59 = arith.constant 9.99999974E-6 : f32
    %152 = vector.broadcast %cst_59 : f32 to vector<16x1xf32>
    %153 = arith.addf %144, %152 : vector<16x1xf32>
    %154 = arith.divf %144, %153 : vector<16x1xf32>
    %cst_60 = arith.constant 9.99999974E-6 : f32
    %155 = vector.broadcast %cst_60 : f32 to vector<16x1xf32>
    %156 = arith.addf %154, %155 : vector<16x1xf32>
    %157 = math.rsqrt %156 : vector<16x1xf32>
    %158 = vector.broadcast %157 : vector<16x1xf32> to vector<16x20xf32>
    %159 = arith.mulf %151, %158 : vector<16x20xf32>
    %c8 = arith.constant 8 : index
    %c0_61 = arith.constant 0 : index
    %160 = vector.load %arg2[%c8, %c0_61] : memref<16x128xf32, #tpu.memory_space<vmem>>, vector<1x20xf32>
    %161 = vector.broadcast %160 : vector<1x20xf32> to vector<16x20xf32>
    %162 = arith.mulf %159, %161 : vector<16x20xf32>
    %c9 = arith.constant 9 : index
    %c0_62 = arith.constant 0 : index
    %163 = vector.load %arg2[%c9, %c0_62] : memref<16x128xf32, #tpu.memory_space<vmem>>, vector<1x20xf32>
    %164 = vector.broadcast %163 : vector<1x20xf32> to vector<16x20xf32>
    %165 = arith.addf %162, %164 : vector<16x20xf32>
    %166 = arith.truncf %165 : vector<16x20xf32> to vector<16x20xbf16>
    %c472 = arith.constant 472 : index
    %c0_63 = arith.constant 0 : index
    %167 = vector.load %arg1[%c472, %c0_63] : memref<496x128xbf16, #tpu.memory_space<vmem>>, vector<20x128xbf16>
    %cst_64 = arith.constant dense<0.000000e+00> : vector<16x128xf32>
    %168 = tpu.matmul %166, %167, %cst_64 {dimension_numbers = #tpu.dot_dimension_numbers<[1], [0], [0], [1], [0, 0, 1, 1], [], []>} : vector<16x20xbf16>, vector<20x128xbf16>, vector<16x128xf32> -> vector<16x128xf32>
    %c10 = arith.constant 10 : index
    %c0_65 = arith.constant 0 : index
    %169 = vector.load %arg2[%c10, %c0_65] : memref<16x128xf32, #tpu.memory_space<vmem>>, vector<1x128xf32>
    %170 = vector.broadcast %169 : vector<1x128xf32> to vector<16x128xf32>
    %171 = arith.addf %168, %170 : vector<16x128xf32>
    %cst_66 = arith.constant dense<0.000000e+00> : vector<16xf32>
    %172 = vector.multi_reduction <add>, %171, %cst_66 [1] : vector<16x128xf32> to vector<16xf32>
    %173 = vector.shape_cast %172 : vector<16xf32> to vector<16x1xf32>
    %cst_67 = arith.constant 5.000000e+01 : f32
    %174 = vector.broadcast %cst_67 : f32 to vector<16x1xf32>
    %175 = arith.divf %173, %174 : vector<16x1xf32>
    %176 = arith.mulf %171, %171 : vector<16x128xf32>
    %cst_68 = arith.constant dense<0.000000e+00> : vector<16xf32>
    %177 = vector.multi_reduction <add>, %176, %cst_68 [1] : vector<16x128xf32> to vector<16xf32>
    %178 = vector.shape_cast %177 : vector<16xf32> to vector<16x1xf32>
    %cst_69 = arith.constant 5.000000e+01 : f32
    %179 = vector.broadcast %cst_69 : f32 to vector<16x1xf32>
    %180 = arith.divf %178, %179 : vector<16x1xf32>
    %181 = arith.mulf %175, %175 : vector<16x1xf32>
    %182 = arith.subf %180, %181 : vector<16x1xf32>
    %183 = vector.broadcast %175 : vector<16x1xf32> to vector<16x128xf32>
    %184 = arith.subf %171, %183 : vector<16x128xf32>
    %cst_70 = arith.constant 9.99999974E-6 : f32
    %185 = vector.broadcast %cst_70 : f32 to vector<16x1xf32>
    %186 = arith.addf %182, %185 : vector<16x1xf32>
    %187 = math.rsqrt %186 : vector<16x1xf32>
    %188 = vector.broadcast %187 : vector<16x1xf32> to vector<16x128xf32>
    %189 = arith.mulf %184, %188 : vector<16x128xf32>
    %c11 = arith.constant 11 : index
    %c0_71 = arith.constant 0 : index
    %190 = vector.load %arg2[%c11, %c0_71] : memref<16x128xf32, #tpu.memory_space<vmem>>, vector<1x128xf32>
    %191 = vector.broadcast %190 : vector<1x128xf32> to vector<16x128xf32>
    %192 = arith.mulf %189, %191 : vector<16x128xf32>
    %c12 = arith.constant 12 : index
    %c0_72 = arith.constant 0 : index
    %193 = vector.load %arg2[%c12, %c0_72] : memref<16x128xf32, #tpu.memory_space<vmem>>, vector<1x128xf32>
    %194 = vector.broadcast %193 : vector<1x128xf32> to vector<16x128xf32>
    %195 = arith.addf %192, %194 : vector<16x128xf32>
    %cst_73 = arith.constant 0.000000e+00 : f32
    %196 = vector.broadcast %cst_73 : f32 to vector<16x128xf32>
    %197 = arith.cmpf oge, %195, %196 : vector<16x128xf32>
    %cst_74 = arith.constant 0.00999999977 : f32
    %198 = vector.broadcast %cst_74 : f32 to vector<16x128xf32>
    %199 = arith.mulf %198, %195 : vector<16x128xf32>
    %200 = arith.select %197, %195, %199 : vector<16x128xi1>, vector<16x128xf32>
    %c0_75 = arith.constant 0 : index
    %c0_76 = arith.constant 0 : index
    %201 = vector.load %arg3[%c0_75, %c0_76] : memref<16x128xf32, #tpu.memory_space<vmem>>, vector<16x128xf32>
    tpu.vector_store %arg3[%c0_75, %c0_76], %200 {strides = array<i32>} : memref<16x128xf32, #tpu.memory_space<vmem>>, vector<16x128xf32>,
    return
  }
}

</mosaic_0001>

<bundles_post_ra>
// kernel: model_forward_padded.1
= control target key start
LH: loop header
LB: loop body
LE: loop exit
PB: predicated region body
PF: predicated region fallthrough
CT: control target
= control target key end

     0   :  { %8 = vsyncpa [#allocation3], 0  ;;  %s1959_s0 = inlined_call_operand.vmem [shape: s32[16,1], index: 0, kind: input, shape index: {}]   ;;  %s1960_s1 = inlined_call_operand.hbm [shape: bf16[496,128], index: 1, kind: input, shape index: {}]   ;;  %s1961_s2 = inlined_call_operand.vmem [shape: f32[16,128], index: 2, kind: input, shape index: {}]   ;;  %s1962_s3 = inlined_call_operand.hbm [shape: f32[16,128], index: 3, kind: output, shape index: {}]  }
   0x1   :  { %9 = vsyncpa [#allocation4], 0  ;;  %s1750_s12 = smov [#allocation2]   ;;  %s1702_s16 = scalar_lea.hbm %s1960_s1, 3968 }
   0x2   :  { %s17_s13 = sshll.u32 %s1750_s12, 4  ;;  %p1703_p0 = scmp.ne.s32.totalorder %s1960_s1, %s1702_s16  ;;  %s18_s13 = int_to_ptr.vmem [resolvable:$true] %s17_s13 }
   0x3   :  { %p1706_p1 = scmp.lt.u32.totalorder %s1702_s16, %s1960_s1 }
   0x5   :  { %p1708_p2 = pnand %p1706_p1, %p1703_p0 }
   0x7   :  { %1711 = shalt.err (!%p1708_p2)
}
   0x8   :  { %s1712_s21 = scalar_lea.vmem %s18_s13, 3968  ;;  %p1717_p4 = scmp.lt.s32.totalorder %s18_s13, %s18_s13 }
   0x9   :  { %p1713_p3 = scmp.ne.s32.totalorder %s18_s13, %s1712_s21  ;;  %p1718_p5 = scmp.lt.s32.totalorder %s1712_s21, %s1712_s21 }
   0xb   :  { %p1719_p6 = por %p1718_p5, %p1717_p4 }
   0xd   :  { %p1720_p7 = pnand %p1719_p6, %p1713_p3 }
   0xf   :  { %1723 = shalt.err (!%p1720_p7)
}
  0x10   :  { %s1751_s22 = smov 64   ;;  %s1752_s23 = smov 4  }
  0x11   :  { %23 = dma.hbm_to_vmem [thread:$0]  %s1960_s1, 3968, %s18_s13, [#allocation3], %s1751_s22, %s1751_s22, %s1752_s23  }
  0x12   :  { %1746 = dma.done.wait [#allocation3], 3968  }
  0x13   :  { %1747 = vsyncadd [#allocation3], 4294963328  ;;  %v1753_v0 = vmov 0   ;;  %v1754_v1 = vmov 0.0   ;;  %v30_v2 = vld [vmem:[%s1959_s0] sm:$0xff]  ;;  %v1628_v3 = vld [vmem:[#allocation2] sm:$0xff]   ;;  %v32_v9 = vlaneseq }
  0x14   :  { %1627 = vset.pattern.permute.xlu0 %v1753_v0  ;;  %1488 = vmatprep.subr.bf16.mxu0 %v1754_v1  ;;  %v31_v4 = vld [vmem:[%s1959_s0 + $0x8] sm:$0xff]  ;;  %v1629_v5 = vld [vmem:[#allocation2 + $0x8] sm:$0xff]   ;;  %vm79_vm0 = vcmask 1043456   ;;  %v1630_v7 = vld [vmem:[#allocation2 + $0x10] sm:$0xff]   ;;  %vm1755_vm1 = vmmov 0   ;;  %vm75_vm4 = vcmask 457728  }
  0x15   :  { %1500 = vmatprep.subr.bf16.mxu1 %v1754_v1  ;;  %35 = vperm.xlu0 %1627, %v30_v2   ;;  %v1631_v6 = vld [vmem:[#allocation2 + $0x18] ss:$0 sps:$4 sm:$0xff]   ;;  %v33_v10 = vand.u32 127, %v32_v9  ;;  %vm126_vm5 = vcmask 162816   ;;  %v1632_v32 = vld [vmem:[#allocation2 + $0x1c] sm:$0xff]   ;;  %vm187_vm6 = vcmask 1041408  }
  0x16   :  { %1489 = vmatpush3.bf16.msra.mxu0 %v1628_v3  ;;  %v81_v8 = vsel %vm79_vm0, %v1631_v6, 0  ;;  %1496 = vmatprep.mubr.msk.bf16.mxu0 %vm1755_vm1, %v1754_v1  ;;  %v1633_v33 = vld [vmem:[#allocation2 + $0x34] sm:$0xff]   ;;  %v1634_v34 = vld [vmem:[#allocation2 + $0x24] ss:$0 sps:$4 sm:$0x33]   ;;  %v1636_v54 = vld [vmem:[#allocation2 + $0x28] sm:$0xff]  }
  0x17   :  { %1490 = vmatprep.subr.bf16.mxu0 %v1754_v1  ;;  %1504 = vmatprep.mubr.msk.bf16.mxu1 %vm1755_vm1, %v1754_v1  ;;  %v1635_v35 = vld [vmem:[#allocation2 + $0x3c] ss:$0 sps:$4 sm:$0x33]   ;;  %v189_v36 = vsel %vm187_vm6, %v1634_v34, 0  ;;  %v1369_v46 = vld [vmem:[%s1961_s2 + $0x6] ss:$0 sm:$0xff] }
  0x18   :  { %1501 = vmatpush3.bf16.msra.mxu1 %v1632_v32  ;;  %v323_v37 = vsel %vm187_vm6, %v1635_v35, 0  ;;  %v1370_v50 = vld [vmem:[%s1961_s2 + $0x7] ss:$0 sm:$0xff]  ;;  %v1637_v56 = vld [vmem:[#allocation2 + $0x30] ss:$0 sps:$4 sm:$0x33]  }
  0x19   :  { %38 = vperm.xlu0 %1627, %v31_v4   ;;  %1502 = vmatprep.subr.bf16.mxu1 %v1754_v1  ;;  %v250_v57 = vsel %vm187_vm6, %v1637_v56, 0  ;;  %v1638_v58 = vld [vmem:[#allocation2 + $0x40] sm:$0xff]   ;;  %v1639_v59 = vld [vmem:[#allocation2 + $0x48] ss:$0 sps:$4 sm:$0x33]   ;;  %v1640_v61 = vld [vmem:[#allocation2 + $0x4c] sm:$0xff]  }
  0x1a   :  { %1491 = vmatpush3.bf16.msra.mxu0 %v1629_v5  ;;  %v384_v60 = vsel %vm187_vm6, %v1639_v59, 0  ;;  %vm498_vm7 = vcmask 130048   ;;  %v1371_v32 = vld [vmem:[%s1961_s2] ss:$0 sm:$0xff]  ;;  %v1647_v56 = vld [vmem:[#allocation2 + $0x84] sm:$0xff]   ;;  %vm1063_vm8 = vcmask 523264  }
  0x1b   :  { %1492 = vmatprep.subr.bf16.mxu0 %v1754_v1  ;;  %s1756_s27 = smov [#allocation5]  }
  0x1c   :  { %1503 = vmatpush3.bf16.msra.mxu1 %v189_v36  ;;  %s1350_s28 = sshll.u32 %s1756_s27, 4  ;;  %s1351_s28 = int_to_ptr.vmem [resolvable:$true] %s1350_s28 }
  0x1d   :  { %1508 = vmatprep.subr.bf16.mxu1 %v1754_v1  ;;  %s1724_s29 = scalar_lea.vmem %s1351_s28, 256  ;;  %p1729_p9 = scmp.lt.s32.totalorder %s1351_s28, %s1351_s28 }
  0x1e   :  { %1493 = vmatpush3.bf16.msra.mxu0 %v1630_v7  ;;  %v1375_v7 = vld [vmem:[%s1961_s2 + $0x1] ss:$0 sm:$0xff]  ;;  %p1725_p8 = scmp.ne.s32.totalorder %s1351_s28, %s1724_s29  ;;  %p1730_p10 = scmp.lt.s32.totalorder %s1724_s29, %s1724_s29 }
  0x1f   :  { %1494 = vmatprep.subr.bf16.mxu0 %v1754_v1 }
  0x20   :  { %p1731_p11 = por %p1730_p10, %p1729_p9 }
  0x22   :  { %1495 = vmatpush3.bf16.msra.mxu0 %v81_v8  ;;  %p1732_p12 = pnand %p1731_p11, %p1725_p8 }
  0x23   :  { %1516 = vmatprep.subr.bf16.mxu0 %v1754_v1 }
  0x94   :  { %v36_v11 = vpop.permute.xlu0 %35 }
  0x95   :  { %vm40_vm2 = vcmp.eq.s32.totalorder %v33_v10, %v36_v11 }
  0x96   :  { %v1362_v13 = vsel %vm40_vm2, 1.0, %v1754_v1 }
  0x98   :  { %v39_v12 = vpop.permute.xlu0 %38 }
  0x99   :  { %vm41_vm3 = vcmp.eq.s32.totalorder %v33_v10, %v39_v12 }
  0x9a   :  { %v1363_v14 = vsel %vm41_vm3, 1.0, %v1754_v1 }
  0x9b   :  { %v46_v15 = vpack.c.bf16 %v1363_v14, %v1362_v13 }
  0x9d   :  { %1497 = vmatmul.mubr.msk.bf16.vlgmr.msra.gmra.mrb[0].mxu0 %vm75_vm4, %v46_v15 }
  0x9e   :  { %1520 = vmatprep.mubr.msk.bf16.mxu0 %vm1755_vm1, %v1754_v1  ;;  %1517 = vmatpush3.bf16.msra.mxu0 %v1633_v33 }
  0x9f   :  { %1518 = vmatprep.subr.bf16.mxu0 %v1754_v1 }
  0xa2   :  { %1519 = vmatpush3.bf16.msra.mxu0 %v323_v37 }
 0x170   :  { %v117_v16 = vpop.f32.mrb[0].mxu0 }
 0x171   :  { %v1498_v17 = vpop.f32.mrb[1].mxu0  ;;  %v127_v18 = vsel %vm126_vm5, %v117_v16, 0.0 }
 0x172   :  { %128 = vadd.xlane.f32.xlu1 %v127_v18  ;;  %v120_v19 = vpop.f32.mrb[2].mxu0 }
 0x173   :  { %v1499_v20 = vpop.f32.mrb[3].mxu0  ;;  %v130_v21 = vsel %vm126_vm5, %v120_v19, 0.0 }
 0x176   :  { %131 = vadd.xlane.f32.xlu1 %v130_v21 }
 0x1ff   :  { %v129_v22 = vpop.xlane.xlu1 %128 }
 0x200   :  { %v134_v23 = vmul.f32 0.05, %v129_v22 }
 0x202   :  { %v136_v24 = vsub.f32 %v117_v16, %v134_v23  ;;  %v1385_v16 = vld [vmem:[%s1961_s2 + $0x3] ss:$0 sm:$0xff] }
 0x203   :  { %v132_v25 = vpop.xlane.xlu1 %131 }
 0x204   :  { %v135_v26 = vmul.f32 0.05, %v132_v25  ;;  %v138_v27 = vmul.f32 %v136_v24, %v136_v24 }
 0x206   :  { %v137_v28 = vsub.f32 %v120_v19, %v135_v26  ;;  %v140_v29 = vsel %vm126_vm5, %v138_v27, 0.0 }
 0x207   :  { %141 = vadd.xlane.f32.xlu0 %v140_v29 }
 0x208   :  { %v139_v30 = vmul.f32 %v137_v28, %v137_v28 }
 0x20a   :  { %v143_v31 = vsel %vm126_vm5, %v139_v30, 0.0 }
 0x20b   :  { %144 = vadd.xlane.f32.xlu1 %v143_v31 }
 0x294   :  { %v142_v38 = vpop.xlane.xlu0 %141 }
 0x295   :  { %v146_v39 = vmul.f32 0.05, %v142_v38 }
 0x297   :  { %v148_v40 = vadd.f32 1e-05, %v146_v39 }
 0x298   :  { %v145_v41 = vpop.xlane.xlu1 %144 }
 0x299   :  { %1662 = vrsqrt.f32 %v148_v40  ;;  %v147_v42 = vmul.f32 0.05, %v145_v41  ;;  %v1381_v41 = vld [vmem:[%s1961_s2 + $0x2] ss:$0 sm:$0xff] }
 0x29b   :  { %v149_v43 = vadd.f32 1e-05, %v147_v42 }
 0x29d   :  { %1664 = vrsqrt.f32 %v149_v43 }
 0x2a3   :  { %v1663_v44 = vpop.eup %1662 }
 0x2a4   :  { %v152_v45 = vmul.f32 %v1663_v44, %v136_v24 }
 0x2a6   :  { %v158_v49 = vmul.f32 %v1369_v46, %v152_v45 }
 0x2a7   :  { %v1665_v47 = vpop.eup %1664 }
 0x2a8   :  { %v153_v48 = vmul.f32 %v1665_v47, %v137_v28  ;;  %v164_v52 = vadd.f32 %v1370_v50, %v158_v49 }
 0x2aa   :  { %v159_v51 = vmul.f32 %v1369_v46, %v153_v48 }
 0x2ac   :  { %v165_v53 = vadd.f32 %v1370_v50, %v159_v51  ;;  %v1641_v50 = vld [vmem:[#allocation2 + $0x54] sm:$0xff]   ;;  %v1642_v51 = vld [vmem:[#allocation2 + $0x5c] sm:$0xff]  }
 0x2ae   :  { %v166_v55 = vpack.c.bf16 %v165_v53, %v164_v52  ;;  %v1643_v52 = vld [vmem:[#allocation2 + $0x64] sm:$0xff]   ;;  %v1644_v53 = vld [vmem:[#allocation2 + $0x6c] sm:$0xff]  }
 0x2b0   :  { %1505 = vmatmul.mubr.msk.bf16.vlgmr.msra.gmra.mrb[0].mxu1 %vm126_vm5, %v166_v55  ;;  %1521 = vmatmul.mubr.msk.bf16.vlgmr.msra.gmra.mrb[4].mxu0 %vm126_vm5, %v166_v55 }
 0x2b1   :  { %1509 = vmatpush3.bf16.msra.mxu1 %v1636_v54  ;;  %1512 = vmatprep.mubr.msk.bf16.mxu1 %vm1755_vm1, %v1754_v1  ;;  %v1645_v54 = vld [vmem:[#allocation2 + $0x74] sm:$0xff]  }
 0x2b2   :  { %1510 = vmatprep.subr.bf16.mxu1 %v1754_v1  ;;  %1534 = vmatprep.mubr.msk.bf16.mxu0 %vm498_vm7, %v1640_v61 }
 0x2b5   :  { %1511 = vmatpush3.bf16.msra.mxu1 %v250_v57  ;;  %v1648_v57 = vld [vmem:[#allocation2 + $0x94] sm:$0xff]  }
 0x2b6   :  { %1524 = vmatprep.subr.bf16.mxu1 %v1754_v1 }
 0x2b8   :  { %1513 = vmatmul.mubr.msk.bf16.vlgmr.msra.gmra.mrb[4].mxu1 %vm126_vm5, %v166_v55 }
 0x2b9   :  { %1525 = vmatpush3.bf16.msra.mxu1 %v1638_v58  ;;  %1528 = vmatprep.mubr.msk.bf16.mxu1 %vm1755_vm1, %v1754_v1  ;;  %v1649_v58 = vld [vmem:[#allocation2 + $0xac] sm:$0xff]  }
 0x2ba   :  { %1526 = vmatprep.subr.bf16.mxu1 %v1754_v1 }
 0x2bd   :  { %1527 = vmatpush3.bf16.msra.mxu1 %v384_v60 }
 0x2be   :  { %1550 = vmatprep.subr.bf16.mxu1 %v1754_v1 }
 0x2c0   :  { %1529 = vmatmul.mubr.msk.bf16.vlgmr.msra.gmra.mrb[8].mxu1 %vm126_vm5, %v166_v55  ;;  %v1646_v55 = vld [vmem:[#allocation2 + $0x7c] sm:$0xff]  }
 0x2c1   :  { %1552 = vmatprep.mubr.msk.bf16.mxu1 %vm1755_vm1, %v1754_v1  ;;  %1551 = vmatpush3.bf16.msra.mxu1 %v1648_v57 }
 0x2c2   :  { %1556 = vmatprep.subr.bf16.mxu1 %v1754_v1 }
 0x383   :  { %v225_v62 = vpop.f32.mrb[0].mxu1  ;;  %v359_v63 = vpop.f32.mrb[4].mxu0 }
 0x384   :  { %v1506_v0 = vpop.f32.mrb[1].mxu1  ;;  %v1522_v2 = vpop.f32.mrb[5].mxu0  ;;  %v226_v35 = vadd.f32 %v1371_v32, %v225_v62  ;;  %v360_v43 = vadd.f32 %v1381_v41, %v359_v63  ;;  %v1650_v62 = vld [vmem:[#allocation2 + $0x8c] sm:$0xff]  }
 0x385   :  { %v228_v3 = vpop.f32.mrb[2].mxu1  ;;  %v362_v4 = vpop.f32.mrb[6].mxu0 }
 0x386   :  { %v1507_v5 = vpop.f32.mrb[3].mxu1  ;;  %v1523_v6 = vpop.f32.mrb[7].mxu0  ;;  %v229_v38 = vadd.f32 %v1371_v32, %v228_v3  ;;  %v363_v45 = vadd.f32 %v1381_v41, %v362_v4 }
 0x387   :  { %v1651_v6 = vld [vmem:[#allocation2 + $0x9c] sm:$0xff]  }
 0x38b   :  { %v286_v8 = vpop.f32.mrb[4].mxu1 }
 0x38c   :  { %v287_v9 = vadd.f32 %v1375_v7, %v286_v8  ;;  %v1514_v10 = vpop.f32.mrb[5].mxu1 }
 0x38d   :  { %v289_v11 = vpop.f32.mrb[6].mxu1 }
 0x38e   :  { %v1379_v12 = vmul.f32 -1.442695, %v287_v9  ;;  %v290_v13 = vadd.f32 %v1375_v7, %v289_v11  ;;  %v1515_v14 = vpop.f32.mrb[7].mxu1 }
 0x390   :  { %1666 = vpow2.f32 %v1379_v12  ;;  %v1380_v15 = vmul.f32 -1.442695, %v290_v13  ;;  %v1652_v12 = vld [vmem:[#allocation2 + $0xa4] sm:$0xff]  }
 0x392   :  { %1668 = vpow2.f32 %v1380_v15 }
 0x393   :  { %v420_v17 = vpop.f32.mrb[8].mxu1 }
 0x394   :  { %v421_v18 = vadd.f32 %v1385_v16, %v420_v17  ;;  %v1530_v19 = vpop.f32.mrb[9].mxu1  ;;  %v1654_v17 = vld [vmem:[#allocation2 + $0xbc] sm:$0xff]  }
 0x395   :  { %v423_v20 = vpop.f32.mrb[10].mxu1 }
 0x396   :  { %v1389_v21 = vmul.f32 -1.442695, %v421_v18  ;;  %v424_v22 = vadd.f32 %v1385_v16, %v423_v20  ;;  %v1531_v23 = vpop.f32.mrb[11].mxu1  ;;  %v1653_v20 = vld [vmem:[#allocation2 + $0xb4] sm:$0xff]  }
 0x398   :  { %1670 = vpow2.f32 %v1389_v21  ;;  %v1390_v24 = vmul.f32 -1.442695, %v424_v22 }
 0x39a   :  { %v1667_v25 = vpop.eup %1666  ;;  %1672 = vpow2.f32 %v1390_v24 }
 0x39b   :  { %v299_v26 = vadd.f32 1.0, %v1667_v25  ;;  %v1655_v25 = vld [vmem:[#allocation2 + $0xc4] sm:$0xff]  }
 0x39c   :  { %v1669_v27 = vpop.eup %1668 }
 0x39d   :  { %1674 = vrcp.f32 %v299_v26  ;;  %v300_v28 = vadd.f32 1.0, %v1669_v27 }
 0x39f   :  { %1676 = vrcp.f32 %v300_v28 }
 0x3a2   :  { %v1671_v29 = vpop.eup %1670 }
 0x3a3   :  { %v433_v30 = vadd.f32 1.0, %v1671_v29 }
 0x3a4   :  { %v1673_v31 = vpop.eup %1672 }
 0x3a5   :  { %1678 = vrcp.f32 %v433_v30  ;;  %v434_v33 = vadd.f32 1.0, %v1673_v31 }
 0x3a7   :  { %v1852_v34 = vpop.eup %1674  ;;  %1680 = vrcp.f32 %v434_v33 }
 0x3a8   :  { %v1093_v36 = vsub.f32 1.0, %v1852_v34 }
 0x3a9   :  { %v1855_v37 = vpop.eup %1676 }
 0x3aa   :  { %v1094_v39 = vsub.f32 1.0, %v1855_v37  ;;  %v1858_v40 = vmul.f32 %v1093_v36, %v226_v35 }
 0x3ac   :  { %v1863_v42 = vmul.f32 %v1094_v39, %v229_v38 }
 0x3af   :  { %v1679_v44 = vpop.eup %1678 }
 0x3b0   :  { %v439_v46 = vmul.f32 %v1679_v44, %v360_v43 }
 0x3b1   :  { %v1681_v47 = vpop.eup %1680 }
 0x3b2   :  { %v440_v48 = vmul.f32 %v1681_v47, %v363_v45 }
 0x3b4   :  { %v441_v49 = vpack.c.bf16 %v440_v48, %v439_v46 }
 0x3b6   :  { %1532 = vmatprep.subr.bf16.mxu0 %v441_v49 }
 0x3b7   :  { %1533 = vmatpush3.bf16.msra.mxu0 %v441_v49 }
 0x3b8   :  { %1574 = vmatprep.subr.bf16.mxu0 %v1754_v1 }
 0x3ba   :  { %1535 = vmatmul.mubr.msk.bf16.vlgmr.msra.gmra.mrb[8].mxu0 %vm498_vm7, %v1641_v50 }
 0x3bb   :  { %1538 = vmatprep.mubr.msk.bf16.mxu0 %vm498_vm7, %v1642_v51  ;;  %1575 = vmatpush3.bf16.msra.mxu0 %v1649_v58 }
 0x3bc   :  { %1586 = vmatprep.subr.bf16.mxu0 %v1754_v1 }
 0x3c2   :  { %1539 = vmatmul.mubr.msk.bf16.gmra.mrb[12].mxu0 %vm498_vm7, %v1643_v52 }
 0x3c3   :  { %1542 = vmatprep.mubr.msk.bf16.mxu0 %vm498_vm7, %v1644_v53 }
 0x3ca   :  { %1543 = vmatmul.mubr.msk.bf16.gmra.mrb[16].mxu0 %vm498_vm7, %v1645_v54 }
 0x3cb   :  { %1546 = vmatprep.mubr.msk.bf16.mxu0 %vm498_vm7, %v1646_v55 }
 0x3d2   :  { %1547 = vmatmul.mubr.msk.bf16.gmra.mrb[20].mxu0 %vm498_vm7, %v1647_v56 }
 0x3d3   :  { %1576 = vmatprep.mubr.msk.bf16.mxu0 %vm1755_vm1, %v1754_v1 }
 0x48d   :  { %v1536_v59 = vpop.f32.mrb[8].mxu0 }
 0x48e   :  { %v557_v60 = vpop.f32.mrb[9].mxu0 }
 0x48f   :  { %v1537_v61 = vpop.f32.mrb[10].mxu0 }
 0x490   :  { %v621_v63 = vpack.c.bf16 %v1537_v61, %v1536_v59  ;;  %v560_v0 = vpop.f32.mrb[11].mxu0 }
 0x491   :  { %v620_v2 = vpack.c.bf16 %v560_v0, %v557_v60 }
 0x492   :  { %1553 = vmatmul.mubr.msk.bf16.vlgmr.msra.gmra.mrb[12].mxu1 %vm498_vm7, %v621_v63 }
 0x493   :  { %1557 = vmatpush3.bf16.msra.mxu1 %v1650_v62  ;;  %1558 = vmatprep.mubr.msk.bf16.mxu1 %vm1755_vm1, %v1754_v1 }
 0x494   :  { %1562 = vmatprep.subr.bf16.mxu1 %v1754_v1 }
 0x495   :  { %v1540_v3 = vpop.f32.mrb[12].mxu0 }
 0x496   :  { %v573_v4 = vpop.f32.mrb[13].mxu0 }
 0x497   :  { %v1541_v5 = vpop.f32.mrb[14].mxu0 }
 0x498   :  { %v623_v7 = vpack.c.bf16 %v1541_v5, %v1540_v3  ;;  %v576_v8 = vpop.f32.mrb[15].mxu0 }
 0x499   :  { %v622_v9 = vpack.c.bf16 %v576_v8, %v573_v4  ;;  %v1423_v8 = vld [vmem:[%s1961_s2 + $0x4] ss:$0 sm:$0xff] }
 0x49a   :  { %1559 = vmatmul.mubr.msk.bf16.vlgmr.msra.gmra.mrb[16].mxu1 %vm498_vm7, %v620_v2 }
 0x49b   :  { %1563 = vmatpush3.bf16.msra.mxu1 %v1651_v6  ;;  %1564 = vmatprep.mubr.msk.bf16.mxu1 %vm1755_vm1, %v1754_v1 }
 0x49c   :  { %1568 = vmatprep.subr.bf16.mxu1 %v1754_v1 }
 0x49d   :  { %v1544_v10 = vpop.f32.mrb[16].mxu0 }
 0x49e   :  { %v589_v11 = vpop.f32.mrb[17].mxu0 }
 0x49f   :  { %v1545_v13 = vpop.f32.mrb[18].mxu0 }
 0x4a0   :  { %v625_v14 = vpack.c.bf16 %v1545_v13, %v1544_v10  ;;  %v592_v15 = vpop.f32.mrb[19].mxu0 }
 0x4a1   :  { %v624_v16 = vpack.c.bf16 %v592_v15, %v589_v11 }
 0x4a2   :  { %1565 = vmatmul.mubr.msk.bf16.vlgmr.msra.gmra.mrb[20].mxu1 %vm498_vm7, %v622_v9 }
 0x4a3   :  { %1569 = vmatpush3.bf16.msra.mxu1 %v1652_v12  ;;  %1570 = vmatprep.mubr.msk.bf16.mxu1 %vm1755_vm1, %v1754_v1 }
 0x4a4   :  { %1577 = vmatmul.mubr.msk.bf16.vlgmr.msra.gmra.mrb[24].mxu0 %vm498_vm7, %v624_v16  ;;  %1580 = vmatprep.subr.bf16.mxu1 %v1754_v1 }
 0x4a5   :  { %v1548_v18 = vpop.f32.mrb[20].mxu0  ;;  %1587 = vmatpush3.bf16.msra.mxu0 %v1654_v17  ;;  %1588 = vmatprep.mubr.msk.bf16.mxu0 %vm1755_vm1, %v1754_v1 }
 0x4a6   :  { %v605_v19 = vpop.f32.mrb[21].mxu0  ;;  %1598 = vmatprep.subr.bf16.mxu0 %v1754_v1 }
 0x4a7   :  { %v1549_v21 = vpop.f32.mrb[22].mxu0 }
 0x4a8   :  { %v627_v22 = vpack.c.bf16 %v1549_v21, %v1548_v18  ;;  %v608_v23 = vpop.f32.mrb[23].mxu0 }
 0x4a9   :  { %v626_v24 = vpack.c.bf16 %v608_v23, %v605_v19 }
 0x4aa   :  { %1571 = vmatmul.mubr.msk.bf16.vlgmr.msra.gmra.mrb[24].mxu1 %vm498_vm7, %v623_v7 }
 0x4ab   :  { %1581 = vmatpush3.bf16.msra.mxu1 %v1653_v20  ;;  %1582 = vmatprep.mubr.msk.bf16.mxu1 %vm1755_vm1, %v1754_v1 }
 0x4ac   :  { %1589 = vmatmul.mubr.msk.bf16.vlgmr.msra.gmra.mrb[28].mxu0 %vm498_vm7, %v626_v24  ;;  %1592 = vmatprep.subr.bf16.mxu1 %v1754_v1 }
 0x4ad   :  { %1606 = vmatprep.mubr.msk.bf16.mxu0 %vm1755_vm1, %v1754_v1 }
 0x4b2   :  { %1583 = vmatmul.mubr.msk.bf16.vlgmr.msra.gmra.mrb[28].mxu1 %vm498_vm7, %v625_v14 }
 0x4b3   :  { %1593 = vmatpush3.bf16.msra.mxu1 %v1655_v25  ;;  %1594 = vmatprep.mubr.msk.bf16.mxu1 %vm1755_vm1, %v1754_v1 }
 0x4b4   :  { %1610 = vmatprep.subr.bf16.mxu1 %v1754_v1 }
 0x4ba   :  { %1595 = vmatmul.mubr.msk.bf16.vlgmr.msra.gmra.mrb[32].mxu1 %vm498_vm7, %v627_v22 }
 0x4bb   :  { %1614 = vmatprep.mubr.msk.bf16.mxu1 %vm1755_vm1, %v1754_v1 }
 0x565   :  { %v675_v26 = vpop.f32.mrb[12].mxu1 }
 0x566   :  { %v1554_v27 = vpop.f32.mrb[13].mxu1 }
 0x567   :  { %v678_v28 = vpop.f32.mrb[14].mxu1 }
 0x568   :  { %v1555_v29 = vpop.f32.mrb[15].mxu1 }
 0x569   :  { %v1657_v29 = vld [vmem:[#allocation2 + $0xd4] sm:$0xff]  }
 0x56d   :  { %v725_v30 = vpop.f32.mrb[16].mxu1 }
 0x56e   :  { %v726_v31 = vadd.f32 %v725_v30, %v675_v26  ;;  %v1560_v32 = vpop.f32.mrb[17].mxu1  ;;  %v1658_v30 = vld [vmem:[#allocation2 + $0xdc] sm:$0xff]  }
 0x56f   :  { %v728_v33 = vpop.f32.mrb[18].mxu1 }
 0x570   :  { %v729_v35 = vadd.f32 %v728_v33, %v678_v28  ;;  %v1561_v36 = vpop.f32.mrb[19].mxu1  ;;  %v1656_v28 = vld [vmem:[#allocation2 + $0xcc] sm:$0xff]  }
 0x571   :  { %1599 = vmatpush3.bf16.msra.mxu0 %v1656_v28 }
 0x572   :  { %1600 = vmatprep.subr.bf16.mxu0 %v1754_v1 }
 0x575   :  { %v777_v38 = vpop.f32.mrb[20].mxu1  ;;  %1601 = vmatpush3.bf16.msra.mxu0 %v1657_v29 }
 0x576   :  { %v784_v39 = vadd.f32 %v777_v38, %v726_v31  ;;  %v1566_v41 = vpop.f32.mrb[21].mxu1  ;;  %1602 = vmatprep.subr.bf16.mxu0 %v1754_v1  ;;  %v1659_v31 = vld [vmem:[#allocation2 + $0xe4] sm:$0xff]  }
 0x577   :  { %v780_v43 = vpop.f32.mrb[22].mxu1  ;;  %v885_v44 = vpop.f32.mrb[24].mxu0 }
 0x578   :  { %v785_v45 = vadd.f32 %v780_v43, %v729_v35  ;;  %v1567_v46 = vpop.f32.mrb[23].mxu1  ;;  %v1578_v47 = vpop.f32.mrb[25].mxu0 }
 0x579   :  { %v888_v48 = vpop.f32.mrb[26].mxu0  ;;  %1603 = vmatpush3.bf16.msra.mxu0 %v1658_v30 }
 0x57a   :  { %v1579_v49 = vpop.f32.mrb[27].mxu0  ;;  %1604 = vmatprep.subr.bf16.mxu0 %v1754_v1 }
 0x57d   :  { %v831_v50 = vpop.f32.mrb[24].mxu1  ;;  %1605 = vmatpush3.bf16.msra.mxu0 %v1659_v31 }
 0x57e   :  { %v838_v51 = vadd.f32 %v831_v50, %v784_v39  ;;  %v1572_v52 = vpop.f32.mrb[25].mxu1 }
 0x57f   :  { %v834_v53 = vpop.f32.mrb[26].mxu1  ;;  %v993_v54 = vpop.f32.mrb[28].mxu0 }
 0x580   :  { %v839_v55 = vadd.f32 %v834_v53, %v785_v45  ;;  %v892_v56 = vadd.f32 %v885_v44, %v838_v51  ;;  %v1573_v57 = vpop.f32.mrb[27].mxu1  ;;  %v1590_v58 = vpop.f32.mrb[29].mxu0  ;;  %v1424_v51 = vld [vmem:[%s1961_s2 + $0x5] ss:$0 sm:$0xff] }
 0x581   :  { %v996_v59 = vpop.f32.mrb[30].mxu0 }
 0x582   :  { %v893_v60 = vadd.f32 %v888_v48, %v839_v55  ;;  %v1591_v61 = vpop.f32.mrb[31].mxu0 }
 0x585   :  { %v939_v62 = vpop.f32.mrb[28].mxu1 }
 0x586   :  { %v946_v63 = vadd.f32 %v939_v62, %v892_v56  ;;  %v1584_v0 = vpop.f32.mrb[29].mxu1 }
 0x587   :  { %v942_v2 = vpop.f32.mrb[30].mxu1 }
 0x588   :  { %v947_v3 = vadd.f32 %v942_v2, %v893_v60  ;;  %v1000_v4 = vadd.f32 %v993_v54, %v946_v63  ;;  %v1585_v5 = vpop.f32.mrb[31].mxu1 }
 0x58a   :  { %v1001_v6 = vadd.f32 %v996_v59, %v947_v3  ;;  %v1660_v3 = vld [vmem:[#allocation2 + $0xec] sm:$0xff]  }
 0x58b   :  { %1611 = vmatpush3.bf16.msra.mxu1 %v1660_v3 }
 0x58c   :  { %1612 = vmatprep.subr.bf16.mxu1 %v1754_v1 }
 0x58d   :  { %v1047_v7 = vpop.f32.mrb[32].mxu1 }
 0x58e   :  { %v1054_v9 = vadd.f32 %v1047_v7, %v1000_v4  ;;  %v1596_v10 = vpop.f32.mrb[33].mxu1  ;;  %v1661_v4 = vld [vmem:[#allocation2 + $0xf4] ss:$0 sps:$4 sm:$0x33]  }
 0x58f   :  { %v1050_v11 = vpop.f32.mrb[34].mxu1  ;;  %v1253_v5 = vsel %vm187_vm6, %v1661_v4, 0 }
 0x590   :  { %v1055_v12 = vadd.f32 %v1050_v11, %v1001_v6  ;;  %v1597_v13 = vpop.f32.mrb[35].mxu1  ;;  %v1061_v14 = vadd.f32 %v1423_v8, %v1054_v9  ;;  %1613 = vmatpush3.bf16.msra.mxu1 %v1253_v5 }
 0x592   :  { %v1064_v15 = vsel %vm1063_vm8, %v1061_v14, 0.0  ;;  %v1062_v16 = vadd.f32 %v1423_v8, %v1055_v12 }
 0x593   :  { %1065 = vadd.xlane.f32.xlu1 %v1064_v15 }
 0x594   :  { %v1067_v17 = vsel %vm1063_vm8, %v1062_v16, 0.0 }
 0x597   :  { %1068 = vadd.xlane.f32.xlu1 %v1067_v17 }
 0x620   :  { %v1066_v18 = vpop.xlane.xlu1 %1065 }
 0x621   :  { %v1071_v19 = vmul.f32 0.015625, %v1066_v18 }
 0x623   :  { %v1073_v20 = vsub.f32 %v1061_v14, %v1071_v19 }
 0x624   :  { %v1069_v21 = vpop.xlane.xlu1 %1068 }
 0x625   :  { %v1072_v22 = vmul.f32 0.015625, %v1069_v21  ;;  %v1075_v23 = vmul.f32 %v1073_v20, %v1073_v20 }
 0x627   :  { %v1074_v24 = vsub.f32 %v1062_v16, %v1072_v22  ;;  %v1077_v25 = vsel %vm1063_vm8, %v1075_v23, 0.0  ;;  %v1430_v22 = vld [vmem:[%s1961_s2 + $0x8] ss:$0 sm:$0xff] }
 0x628   :  { %1078 = vadd.xlane.f32.xlu1 %v1077_v25 }
 0x629   :  { %v1076_v26 = vmul.f32 %v1074_v24, %v1074_v24 }
 0x62b   :  { %v1080_v27 = vsel %vm1063_vm8, %v1076_v26, 0.0 }
 0x62c   :  { %1081 = vadd.xlane.f32.xlu1 %v1080_v27  ;;  %v1431_v27 = vld [vmem:[%s1961_s2 + $0x9] ss:$0 sm:$0xff] }
 0x6b5   :  { %v1079_v32 = vpop.xlane.xlu1 %1078 }
 0x6b6   :  { %v1083_v33 = vmul.f32 0.015625, %v1079_v32  ;;  %v1432_v32 = vld [vmem:[%s1961_s2 + $0xa] ss:$0 sm:$0xff] }
 0x6b8   :  { %v1085_v35 = vadd.f32 1e-05, %v1083_v33 }
 0x6b9   :  { %v1082_v36 = vpop.xlane.xlu1 %1081 }
 0x6ba   :  { %1682 = vrsqrt.f32 %v1085_v35  ;;  %v1084_v38 = vmul.f32 0.015625, %v1082_v36 }
 0x6bc   :  { %v1086_v39 = vadd.f32 1e-05, %v1084_v38 }
 0x6be   :  { %1684 = vrsqrt.f32 %v1086_v39 }
 0x6c4   :  { %v1683_v41 = vpop.eup %1682 }
 0x6c5   :  { %v1089_v43 = vmul.f32 %v1683_v41, %v1073_v20 }
 0x6c7   :  { %v1091_v44 = vmul.f32 %v1852_v34, %v1089_v43 }
 0x6c8   :  { %v1685_v45 = vpop.eup %1684 }
 0x6c9   :  { %v1090_v46 = vmul.f32 %v1685_v45, %v1074_v24  ;;  %v1097_v47 = vadd.f32 %v1858_v40, %v1091_v44 }
 0x6cb   :  { %v1092_v48 = vmul.f32 %v1855_v37, %v1090_v46 }
 0x6cd   :  { %v1098_v49 = vadd.f32 %v1863_v42, %v1092_v48 }
 0x6cf   :  { %v1099_v50 = vpack.c.bf16 %v1098_v49, %v1097_v47 }
 0x6d1   :  { %1607 = vmatmul.mubr.msk.bf16.vlgmr.msra.gmra.mrb[32].mxu0 %vm1063_vm8, %v1099_v50 }
 0x7a4   :  { %v1174_v52 = vpop.f32.mrb[32].mxu0 }
 0x7a5   :  { %v1175_v53 = vadd.f32 %v1424_v51, %v1174_v52  ;;  %v1608_v54 = vpop.f32.mrb[33].mxu0 }
 0x7a6   :  { %v1177_v55 = vpop.f32.mrb[34].mxu0 }
 0x7a7   :  { %v1178_v34 = vadd.f32 %v1424_v51, %v1177_v55  ;;  %v1609_v56 = vpop.f32.mrb[35].mxu0  ;;  %v1181_v57 = vsel %vm126_vm5, %v1175_v53, 0.0 }
 0x7a8   :  { %1182 = vadd.xlane.f32.xlu1 %v1181_v57 }
 0x7a9   :  { %v1184_v37 = vsel %vm126_vm5, %v1178_v34, 0.0 }
 0x7ac   :  { %1185 = vadd.xlane.f32.xlu1 %v1184_v37 }
 0x835   :  { %v1183_v40 = vpop.xlane.xlu1 %1182 }
 0x836   :  { %v1187_v42 = vmul.f32 0.05, %v1183_v40 }
 0x838   :  { %v1189_v58 = vsub.f32 %v1175_v53, %v1187_v42  ;;  %v1436_v42 = vld [vmem:[%s1961_s2 + $0xb] ss:$0 sm:$0xff] }
 0x839   :  { %v1186_v59 = vpop.xlane.xlu1 %1185 }
 0x83a   :  { %v1188_v60 = vmul.f32 0.05, %v1186_v59  ;;  %v1191_v61 = vmul.f32 %v1189_v58, %v1189_v58 }
 0x83c   :  { %v1190_v62 = vsub.f32 %v1178_v34, %v1188_v60  ;;  %v1193_v63 = vsel %vm126_vm5, %v1191_v61, 0.0  ;;  %v1437_v61 = vld [vmem:[%s1961_s2 + $0xc] ss:$0 sm:$0xff] }
 0x83d   :  { %1194 = vadd.xlane.f32.xlu1 %v1193_v63 }
 0x83e   :  { %v1192_v0 = vmul.f32 %v1190_v62, %v1190_v62 }
 0x840   :  { %v1196_v2 = vsel %vm126_vm5, %v1192_v0, 0.0 }
 0x841   :  { %1197 = vadd.xlane.f32.xlu0 %v1196_v2 }
 0x8ca   :  { %v1195_v6 = vpop.xlane.xlu1 %1194 }
 0x8cb   :  { %v1199_v7 = vmul.f32 0.05, %v1195_v6 }
 0x8cd   :  { %v1201_v8 = vadd.f32 1e-05, %v1199_v7 }
 0x8ce   :  { %v1198_v9 = vpop.xlane.xlu0 %1197 }
 0x8cf   :  { %v1200_v10 = vmul.f32 0.05, %v1198_v9  ;;  %1686 = vrcp.f32 %v1201_v8 }
 0x8d1   :  { %v1202_v11 = vadd.f32 1e-05, %v1200_v10 }
 0x8d3   :  { %1688 = vrcp.f32 %v1202_v11 }
 0x8d4   :  { %1690 = vrsqrt.f32 %v1201_v8 }
 0x8d5   :  { %1692 = vrsqrt.f32 %v1202_v11 }
 0x8d9   :  { %v1687_v12 = vpop.eup %1686 }
 0x8da   :  { %v1208_v13 = vmul.f32 %v1687_v12, %v1199_v7 }
 0x8dc   :  { %v1211_v14 = vadd.f32 1e-05, %v1208_v13 }
 0x8dd   :  { %v1689_v15 = vpop.eup %1688 }
 0x8de   :  { %1694 = vrsqrt.f32 %v1211_v14  ;;  %v1210_v16 = vmul.f32 %v1689_v15, %v1200_v10  ;;  %v1691_v17 = vpop.eup %1690 }
 0x8df   :  { %v1693_v18 = vpop.eup %1692  ;;  %v1205_v19 = vmul.f32 %v1691_v17, %v1189_v58 }
 0x8e0   :  { %v1212_v1 = vadd.f32 1e-05, %v1210_v16  ;;  %v1206_v23 = vmul.f32 %v1693_v18, %v1190_v62 }
 0x8e2   :  { %1696 = vrsqrt.f32 %v1212_v1 }
 0x8e8   :  { %v1695_v20 = vpop.eup %1694 }
 0x8e9   :  { %v1215_v21 = vmul.f32 %v1695_v20, %v1205_v19 }
 0x8eb   :  { %v1222_v26 = vmul.f32 %v1430_v22, %v1215_v21 }
 0x8ec   :  { %v1697_v24 = vpop.eup %1696 }
 0x8ed   :  { %v1216_v25 = vmul.f32 %v1697_v24, %v1206_v23  ;;  %v1229_v29 = vadd.f32 %v1431_v27, %v1222_v26 }
 0x8ef   :  { %v1223_v28 = vmul.f32 %v1430_v22, %v1216_v25 }
 0x8f1   :  { %v1230_v30 = vadd.f32 %v1431_v27, %v1223_v28 }
 0x8f3   :  { %v1231_v31 = vpack.c.bf16 %v1230_v30, %v1229_v29 }
 0x8f5   :  { %1615 = vmatmul.mubr.msk.bf16.vlgmr.msra.gmra.mrb[36].mxu1 %vm126_vm5, %v1231_v31 }
 0x9c8   :  { %v1289_v33 = vpop.f32.mrb[36].mxu1 }
 0x9c9   :  { %v1290_v35 = vadd.f32 %v1432_v32, %v1289_v33  ;;  %v1616_v36 = vpop.f32.mrb[37].mxu1 }
 0x9ca   :  { %v1292_v38 = vpop.f32.mrb[38].mxu1 }
 0x9cb   :  { %v1293_v39 = vadd.f32 %v1432_v32, %v1292_v38  ;;  %1296 = vadd.xlane.f32.xlu1 %v1290_v35  ;;  %v1617_v41 = vpop.f32.mrb[39].mxu1  ;;  %v1303_v43 = vmul.f32 %v1290_v35, %v1290_v35 }
 0x9cd   :  { %1298 = vadd.xlane.f32.xlu0 %v1293_v39  ;;  %v1304_v44 = vmul.f32 %v1293_v39, %v1293_v39 }
 0x9cf   :  { %1305 = vadd.xlane.f32.xlu1 %v1303_v43 }
 0x9d1   :  { %1307 = vadd.xlane.f32.xlu0 %v1304_v44 }
 0xa58   :  { %v1297_v45 = vpop.xlane.xlu1 %1296 }
 0xa59   :  { %v1301_v46 = vmul.f32 0.02, %v1297_v45 }
 0xa5a   :  { %v1299_v47 = vpop.xlane.xlu0 %1298 }
 0xa5b   :  { %v1302_v48 = vmul.f32 0.02, %v1299_v47  ;;  %v1311_v50 = vmul.f32 %v1301_v46, %v1301_v46  ;;  %v1315_v37 = vsub.f32 %v1290_v35, %v1301_v46 }
 0xa5c   :  { %v1306_v49 = vpop.xlane.xlu1 %1305 }
 0xa5d   :  { %v1309_v51 = vmul.f32 0.02, %v1306_v49  ;;  %v1312_v53 = vmul.f32 %v1302_v48, %v1302_v48  ;;  %v1316_v58 = vsub.f32 %v1293_v39, %v1302_v48 }
 0xa5e   :  { %v1308_v52 = vpop.xlane.xlu0 %1307 }
 0xa5f   :  { %v1313_v54 = vsub.f32 %v1309_v51, %v1311_v50  ;;  %v1310_v55 = vmul.f32 0.02, %v1308_v52 }
 0xa61   :  { %v1317_v34 = vadd.f32 1e-05, %v1313_v54  ;;  %v1314_v56 = vsub.f32 %v1310_v55, %v1312_v53 }
 0xa63   :  { %1698 = vrsqrt.f32 %v1317_v34  ;;  %v1318_v57 = vadd.f32 1e-05, %v1314_v56 }
 0xa65   :  { %1700 = vrsqrt.f32 %v1318_v57 }
 0xa6d   :  { %v1699_v40 = vpop.eup %1698 }
 0xa6e   :  { %v1321_v59 = vmul.f32 %v1699_v40, %v1315_v37 }
 0xa6f   :  { %v1701_v60 = vpop.eup %1700 }
 0xa70   :  { %v1328_v62 = vmul.f32 %v1436_v42, %v1321_v59  ;;  %v1322_v63 = vmul.f32 %v1701_v60, %v1316_v58 }
 0xa72   :  { %v1329_v0 = vmul.f32 %v1436_v42, %v1322_v63  ;;  %v1335_v2 = vadd.f32 %v1437_v61, %v1328_v62 }
 0xa74   :  { %v1336_v3 = vadd.f32 %v1437_v61, %v1329_v0  ;;  %vm1337_vm9 = vcmp.ge.f32.partialorder %v1335_v2, 0.0  ;;  %v1339_v4 = vmul.f32 0.01, %v1335_v2 }
 0xa76   :  { %vm1338_vm10 = vcmp.ge.f32.partialorder %v1336_v3, 0.0  ;;  %v1340_v5 = vmul.f32 0.01, %v1336_v3  ;;  %v1341_v6 = vsel %vm1337_vm9, %v1335_v2, %v1339_v4 }
 0xa77   :  { %1343 = vst [vmem:[#allocation5] sm:$0xff] %v1341_v6 }
 0xa78   :  { %v1342_v7 = vsel %vm1338_vm10, %v1336_v3, %v1340_v5 }
 0xa79   :  { %1344 = vst [vmem:[#allocation5 + $0x8] sm:$0xff] %v1342_v7 }
 0xa7a   :  { %1735 = shalt.err (!%p1732_p12)
}
 0xa7b   :  { %s1736_s1 = scalar_lea.hbm %s1962_s3, 256 }
 0xa7c   :  { %p1737_p13 = scmp.ne.s32.totalorder %s1962_s3, %s1736_s1  ;;  %p1740_p0 = scmp.lt.u32.totalorder %s1736_s1, %s1962_s3 }
 0xa7e   :  { %p1742_p1 = pnand %p1740_p0, %p1737_p13 }
 0xa80   :  { %1745 = shalt.err (!%p1742_p1)
}
 0xa81   :  { %s1757_s7 = smov 128   ;;  %s1758_s8 = smov 8  }
 0xa82   :  { %1356 = dma.vmem_to_hbm [thread:$0]  %s1351_s28, 256, %s1962_s3, [#allocation4], %s1757_s7, %s1757_s7, %s1758_s8  }
 0xa83   :  { %1748 = dma.done.wait [#allocation4], 256  }
 0xa84   :  { %1749 = vsyncadd [#allocation4], 4294967040 }
 0xa85   :  { %1360 = vsyncpa [#allocation3], 1 }
 0xa86   :  { %1361 = vsyncpa [#allocation4], 1 }

</bundles_post_ra>
